<compile_context>
chip_gen: v6e
topology: v6e:2x2x1
jax: 0.10.0
libtpu: 0.0.40
codegen_flags: <defaults>
</compile_context>

<pallas_src>
import jax
import jax.numpy as jnp
from jax.experimental import pallas as pl
from jax.experimental.pallas import tpu as pltpu


def conv_relu(x_nchw, weight_oihw, bias, *, compute_dtype=jnp.bfloat16):
    """Matches PyTorch ConvRelu.forward: Conv2d(Cin, Cout, 3, padding=1) + ReLU.

    x_nchw:      (N, Cin, H, W)  float32
    weight_oihw: (Cout, Cin, 3, 3)
    bias:        (Cout,)
    returns:     (N, Cout, H, W)
    """
    N, Cin, H, W = x_nchw.shape
    Cout, Cin_w, KH, KW = weight_oihw.shape
    assert (KH, KW) == (3, 3) and Cin_w == Cin
    HW = H * W
    Lp = HW + 2 * W + 2          # flat-padded length per (n, ci)

    cd = jnp.dtype(compute_dtype) if compute_dtype is not None else x_nchw.dtype

    # Row-major flat activations with a single zero pad of (W+1) on each side.
    # For output position m = h*W + w, tap (kh, kw) reads x_flat[:, m + kh*W + kw]:
    # the top/bottom halo rows and the two end elements land in the zero pad,
    # and the horizontal wrap (w==0 with kw==0 / w==W-1 with kw==2) is masked
    # in-kernel.  This is the only extra wrapper pass over the input (~1.1x).
    x_flat = jnp.pad(x_nchw.astype(cd).reshape(N, Cin, HW),
                     ((0, 0), (0, 0), (W + 1, W + 1)))            # (N, Cin, Lp)

    # Per-tap weights: w_taps[kh*3 + kw] = weight[:, :, kh, kw]  -> (9, Cout, Cin)
    w_taps = weight_oihw.transpose(2, 3, 0, 1).reshape(9, Cout, Cin).astype(cd)
    b2 = bias.reshape(Cout, 1).astype(jnp.float32)

    def kernel(x_ref, w_ref, b_ref, o_ref):
        # x_ref: (1, Cin, Lp)  w_ref: (9, Cout, Cin)  b_ref: (Cout, 1)
        # o_ref: (1, Cout, HW)
        col = jax.lax.broadcasted_iota(jnp.int32, (1, HW), 1)
        wpos = col % W
        acc_c = jnp.zeros((Cout, HW), jnp.float32)   # kw == 1 taps (no wrap)
        acc_l = jnp.zeros((Cout, HW), jnp.float32)   # kw == 0 taps (mask w == 0)
        acc_r = jnp.zeros((Cout, HW), jnp.float32)   # kw == 2 taps (mask w == W-1)
        for kh in range(3):
            for kw in range(3):
                s = kh * W + kw                                   # static lane shift
                xs = x_ref[0, :, s:s + HW]                        # (Cin, HW)
                t = jnp.dot(w_ref[kh * 3 + kw], xs,
                            preferred_element_type=jnp.float32)   # (Cout, HW) f32
                if kw == 0:
                    acc_l = acc_l + t
                elif kw == 1:
                    acc_c = acc_c + t
                else:
                    acc_r = acc_r + t
        acc = (acc_c
               + jnp.where(wpos == 0, 0.0, acc_l)
               + jnp.where(wpos == W - 1, 0.0, acc_r))
        o_ref[0] = jnp.maximum(acc + b_ref[...], 0.0).astype(o_ref.dtype)

    out_flat = pl.pallas_call(
        kernel,
        out_shape=jax.ShapeDtypeStruct((N, Cout, HW), x_nchw.dtype),
        grid_spec=pltpu.PrefetchScalarGridSpec(
            num_scalar_prefetch=0,
            grid=(N,),                                            # even, >= 2 blocks
            in_specs=[
                pl.BlockSpec((1, Cin, Lp), lambda n: (n, 0, 0)),  # streamed activations
                pl.BlockSpec((9, Cout, Cin), lambda n: (0, 0, 0)),  # resident weights
                pl.BlockSpec((Cout, 1), lambda n: (0, 0)),          # resident bias
            ],
            out_specs=pl.BlockSpec((1, Cout, HW), lambda n: (n, 0, 0)),
        ),
        compiler_params=pltpu.CompilerParams(
            dimension_semantics=("parallel",)),
    )(x_flat, w_taps, b2)

    # Free trailing-dim split; no transpose / extra HBM pass over the output.
    return out_flat.reshape(N, Cout, H, W)


if __name__ == "__main__":
    # Small shapes consistent with ConvRelu(in_=4, out=8) on a 2x4x16x16 input.
    N, Cin, H, W, Cout = 2, 4, 16, 16, 8

    key = jax.random.PRNGKey(0)
    k1, k2, k3 = jax.random.split(key, 3)
    x = jax.random.normal(k1, (N, Cin, H, W), dtype=jnp.float32)
    weight = jax.random.normal(k2, (Cout, Cin, 3, 3), dtype=jnp.float32) * 0.1
    bias = jax.random.normal(k3, (Cout,), dtype=jnp.float32) * 0.1

    # Reference: XLA conv (NCHW, OIHW) + bias + ReLU.
    ref = jax.lax.conv_general_dilated(
        x, weight, window_strides=(1, 1), padding=((1, 1), (1, 1)),
        dimension_numbers=("NCHW", "OIHW", "NCHW"))
    ref = jnp.maximum(ref + bias.reshape(1, Cout, 1, 1), 0.0)

    # Strict f32 path.
    out_f32 = jax.block_until_ready(
        conv_relu(x, weight, bias, compute_dtype=jnp.float32))
    assert out_f32.shape == (N, Cout, H, W)
    assert jnp.allclose(out_f32, ref, atol=1e-4, rtol=1e-4)

    # Default bf16-stream path (f32 accumulation) — looser tolerance per bf16.
    out_bf16 = jax.block_until_ready(conv_relu(x, weight, bias))
    assert out_bf16.shape == (N, Cout, H, W)
    assert jnp.allclose(out_bf16, ref, atol=5e-2, rtol=5e-2)

    print("KERNEL_OK")
</pallas_src>

<mosaic_0001>
module attributes {stable_mosaic.version = 11 : i64} {
  func.func @kernel(%arg0: i32, %arg1: memref<1x4x290xf32, #tpu.memory_space<vmem>>, %arg2: memref<9x8x4xf32, #tpu.memory_space<vmem>>, %arg3: memref<8x1xf32, #tpu.memory_space<vmem>>, %arg4: memref<1x8x256xf32, #tpu.memory_space<vmem>>) attributes {dimension_semantics = [#tpu.dimension_semantics<parallel>], iteration_bounds = array<i64: 2>, scalar_prefetch = 0 : i64, scratch_operands = 0 : i64, tpu.core_type = #tpu.core_type<tc>, window_params = [{transform_indices = @transform_0, window_bounds = array<i64: 1, 4, 290>}, {pipeline_mode = #tpu.pipeline_mode<synchronous>, transform_indices = @transform_1, window_bounds = array<i64: 9, 8, 4>}, {pipeline_mode = #tpu.pipeline_mode<synchronous>, transform_indices = @transform_2, window_bounds = array<i64: 8, 1>}, {transform_indices = @transform_3, window_bounds = array<i64: 1, 8, 256>}]} {
    %0 = tpu.iota {dimensions = array<i32: 1>} : vector<1x256xi32>
    %c16_i32 = arith.constant 16 : i32
    %c0_i32 = arith.constant 0 : i32
    %1 = arith.cmpi eq, %c16_i32, %c0_i32 : i32
    %c1_i32 = arith.constant 1 : i32
    %2 = arith.select %1, %c1_i32, %c16_i32 : i32
    %3 = vector.broadcast %2 : i32 to vector<1x256xi32>
    %4 = arith.remsi %0, %3 : vector<1x256xi32>
    %c0_i32_0 = arith.constant 0 : i32
    %5 = vector.broadcast %c0_i32_0 : i32 to vector<1x256xi32>
    %6 = arith.cmpi ne, %4, %5 : vector<1x256xi32>
    %c0_i32_1 = arith.constant 0 : i32
    %7 = vector.broadcast %c0_i32_1 : i32 to vector<1x256xi32>
    %8 = arith.cmpi slt, %4, %7 : vector<1x256xi32>
    %c0_i32_2 = arith.constant 0 : i32
    %9 = arith.cmpi slt, %2, %c0_i32_2 : i32
    %10 = vector.broadcast %9 : i1 to vector<1x256xi1>
    %11 = vector.broadcast %10 : vector<1x256xi1> to vector<1x256xi1>
    %12 = arith.xori %8, %11 : vector<1x256xi1>
    %13 = arith.andi %12, %6 : vector<1x256xi1>
    %14 = vector.broadcast %2 : i32 to vector<1x256xi32>
    %15 = arith.addi %4, %14 : vector<1x256xi32>
    %16 = arith.select %13, %15, %4 : vector<1x256xi1>, vector<1x256xi32>
    %cst = arith.constant 0.000000e+00 : f32
    %17 = vector.broadcast %cst : f32 to vector<8x256xf32>
    %cst_3 = arith.constant 0.000000e+00 : f32
    %18 = vector.broadcast %cst_3 : f32 to vector<8x256xf32>
    %cst_4 = arith.constant 0.000000e+00 : f32
    %19 = vector.broadcast %cst_4 : f32 to vector<8x256xf32>
    %c0 = arith.constant 0 : index
    %c0_5 = arith.constant 0 : index
    %c0_6 = arith.constant 0 : index
    %20 = vector.load %arg1[%c0, %c0_5, %c0_6] : memref<1x4x290xf32, #tpu.memory_space<vmem>>, vector<1x4x256xf32>
    %21 = vector.shape_cast %20 : vector<1x4x256xf32> to vector<4x256xf32>
    %c0_7 = arith.constant 0 : index
    %c0_8 = arith.constant 0 : index
    %c0_9 = arith.constant 0 : index
    %22 = vector.load %arg2[%c0_7, %c0_8, %c0_9] : memref<9x8x4xf32, #tpu.memory_space<vmem>>, vector<1x8x4xf32>
    %23 = vector.shape_cast %22 : vector<1x8x4xf32> to vector<8x4xf32>
    %cst_10 = arith.constant dense<0.000000e+00> : vector<8x256xf32>
    %24 = tpu.matmul %23, %21, %cst_10 {dimension_numbers = #tpu.dot_dimension_numbers<[1], [0], [0], [1], [0, 0, 1, 1], [], []>} : vector<8x4xf32>, vector<4x256xf32>, vector<8x256xf32> -> vector<8x256xf32>
    %25 = arith.addf %18, %24 : vector<8x256xf32>
    %c0_11 = arith.constant 0 : index
    %c0_12 = arith.constant 0 : index
    %c1 = arith.constant 1 : index
    %26 = vector.load %arg1[%c0_11, %c0_12, %c1] : memref<1x4x290xf32, #tpu.memory_space<vmem>>, vector<1x4x256xf32>
    %27 = vector.shape_cast %26 : vector<1x4x256xf32> to vector<4x256xf32>
    %c1_13 = arith.constant 1 : index
    %c0_14 = arith.constant 0 : index
    %c0_15 = arith.constant 0 : index
    %28 = vector.load %arg2[%c1_13, %c0_14, %c0_15] : memref<9x8x4xf32, #tpu.memory_space<vmem>>, vector<1x8x4xf32>
    %29 = vector.shape_cast %28 : vector<1x8x4xf32> to vector<8x4xf32>
    %cst_16 = arith.constant dense<0.000000e+00> : vector<8x256xf32>
    %30 = tpu.matmul %29, %27, %cst_16 {dimension_numbers = #tpu.dot_dimension_numbers<[1], [0], [0], [1], [0, 0, 1, 1], [], []>} : vector<8x4xf32>, vector<4x256xf32>, vector<8x256xf32> -> vector<8x256xf32>
    %31 = arith.addf %17, %30 : vector<8x256xf32>
    %c0_17 = arith.constant 0 : index
    %c0_18 = arith.constant 0 : index
    %c2 = arith.constant 2 : index
    %32 = vector.load %arg1[%c0_17, %c0_18, %c2] : memref<1x4x290xf32, #tpu.memory_space<vmem>>, vector<1x4x256xf32>
    %33 = vector.shape_cast %32 : vector<1x4x256xf32> to vector<4x256xf32>
    %c2_19 = arith.constant 2 : index
    %c0_20 = arith.constant 0 : index
    %c0_21 = arith.constant 0 : index
    %34 = vector.load %arg2[%c2_19, %c0_20, %c0_21] : memref<9x8x4xf32, #tpu.memory_space<vmem>>, vector<1x8x4xf32>
    %35 = vector.shape_cast %34 : vector<1x8x4xf32> to vector<8x4xf32>
    %cst_22 = arith.constant dense<0.000000e+00> : vector<8x256xf32>
    %36 = tpu.matmul %35, %33, %cst_22 {dimension_numbers = #tpu.dot_dimension_numbers<[1], [0], [0], [1], [0, 0, 1, 1], [], []>} : vector<8x4xf32>, vector<4x256xf32>, vector<8x256xf32> -> vector<8x256xf32>
    %37 = arith.addf %19, %36 : vector<8x256xf32>
    %c0_23 = arith.constant 0 : index
    %c0_24 = arith.constant 0 : index
    %c16 = arith.constant 16 : index
    %38 = vector.load %arg1[%c0_23, %c0_24, %c16] : memref<1x4x290xf32, #tpu.memory_space<vmem>>, vector<1x4x256xf32>
    %39 = vector.shape_cast %38 : vector<1x4x256xf32> to vector<4x256xf32>
    %c3 = arith.constant 3 : index
    %c0_25 = arith.constant 0 : index
    %c0_26 = arith.constant 0 : index
    %40 = vector.load %arg2[%c3, %c0_25, %c0_26] : memref<9x8x4xf32, #tpu.memory_space<vmem>>, vector<1x8x4xf32>
    %41 = vector.shape_cast %40 : vector<1x8x4xf32> to vector<8x4xf32>
    %cst_27 = arith.constant dense<0.000000e+00> : vector<8x256xf32>
    %42 = tpu.matmul %41, %39, %cst_27 {dimension_numbers = #tpu.dot_dimension_numbers<[1], [0], [0], [1], [0, 0, 1, 1], [], []>} : vector<8x4xf32>, vector<4x256xf32>, vector<8x256xf32> -> vector<8x256xf32>
    %43 = arith.addf %25, %42 : vector<8x256xf32>
    %c0_28 = arith.constant 0 : index
    %c0_29 = arith.constant 0 : index
    %c17 = arith.constant 17 : index
    %44 = vector.load %arg1[%c0_28, %c0_29, %c17] : memref<1x4x290xf32, #tpu.memory_space<vmem>>, vector<1x4x256xf32>
    %45 = vector.shape_cast %44 : vector<1x4x256xf32> to vector<4x256xf32>
    %c4 = arith.constant 4 : index
    %c0_30 = arith.constant 0 : index
    %c0_31 = arith.constant 0 : index
    %46 = vector.load %arg2[%c4, %c0_30, %c0_31] : memref<9x8x4xf32, #tpu.memory_space<vmem>>, vector<1x8x4xf32>
    %47 = vector.shape_cast %46 : vector<1x8x4xf32> to vector<8x4xf32>
    %cst_32 = arith.constant dense<0.000000e+00> : vector<8x256xf32>
    %48 = tpu.matmul %47, %45, %cst_32 {dimension_numbers = #tpu.dot_dimension_numbers<[1], [0], [0], [1], [0, 0, 1, 1], [], []>} : vector<8x4xf32>, vector<4x256xf32>, vector<8x256xf32> -> vector<8x256xf32>
    %49 = arith.addf %31, %48 : vector<8x256xf32>
    %c0_33 = arith.constant 0 : index
    %c0_34 = arith.constant 0 : index
    %c18 = arith.constant 18 : index
    %50 = vector.load %arg1[%c0_33, %c0_34, %c18] : memref<1x4x290xf32, #tpu.memory_space<vmem>>, vector<1x4x256xf32>
    %51 = vector.shape_cast %50 : vector<1x4x256xf32> to vector<4x256xf32>
    %c5 = arith.constant 5 : index
    %c0_35 = arith.constant 0 : index
    %c0_36 = arith.constant 0 : index
    %52 = vector.load %arg2[%c5, %c0_35, %c0_36] : memref<9x8x4xf32, #tpu.memory_space<vmem>>, vector<1x8x4xf32>
    %53 = vector.shape_cast %52 : vector<1x8x4xf32> to vector<8x4xf32>
    %cst_37 = arith.constant dense<0.000000e+00> : vector<8x256xf32>
    %54 = tpu.matmul %53, %51, %cst_37 {dimension_numbers = #tpu.dot_dimension_numbers<[1], [0], [0], [1], [0, 0, 1, 1], [], []>} : vector<8x4xf32>, vector<4x256xf32>, vector<8x256xf32> -> vector<8x256xf32>
    %55 = arith.addf %37, %54 : vector<8x256xf32>
    %c0_38 = arith.constant 0 : index
    %c0_39 = arith.constant 0 : index
    %c32 = arith.constant 32 : index
    %56 = vector.load %arg1[%c0_38, %c0_39, %c32] : memref<1x4x290xf32, #tpu.memory_space<vmem>>, vector<1x4x256xf32>
    %57 = vector.shape_cast %56 : vector<1x4x256xf32> to vector<4x256xf32>
    %c6 = arith.constant 6 : index
    %c0_40 = arith.constant 0 : index
    %c0_41 = arith.constant 0 : index
    %58 = vector.load %arg2[%c6, %c0_40, %c0_41] : memref<9x8x4xf32, #tpu.memory_space<vmem>>, vector<1x8x4xf32>
    %59 = vector.shape_cast %58 : vector<1x8x4xf32> to vector<8x4xf32>
    %cst_42 = arith.constant dense<0.000000e+00> : vector<8x256xf32>
    %60 = tpu.matmul %59, %57, %cst_42 {dimension_numbers = #tpu.dot_dimension_numbers<[1], [0], [0], [1], [0, 0, 1, 1], [], []>} : vector<8x4xf32>, vector<4x256xf32>, vector<8x256xf32> -> vector<8x256xf32>
    %61 = arith.addf %43, %60 : vector<8x256xf32>
    %c0_43 = arith.constant 0 : index
    %c0_44 = arith.constant 0 : index
    %c33 = arith.constant 33 : index
    %62 = vector.load %arg1[%c0_43, %c0_44, %c33] : memref<1x4x290xf32, #tpu.memory_space<vmem>>, vector<1x4x256xf32>
    %63 = vector.shape_cast %62 : vector<1x4x256xf32> to vector<4x256xf32>
    %c7 = arith.constant 7 : index
    %c0_45 = arith.constant 0 : index
    %c0_46 = arith.constant 0 : index
    %64 = vector.load %arg2[%c7, %c0_45, %c0_46] : memref<9x8x4xf32, #tpu.memory_space<vmem>>, vector<1x8x4xf32>
    %65 = vector.shape_cast %64 : vector<1x8x4xf32> to vector<8x4xf32>
    %cst_47 = arith.constant dense<0.000000e+00> : vector<8x256xf32>
    %66 = tpu.matmul %65, %63, %cst_47 {dimension_numbers = #tpu.dot_dimension_numbers<[1], [0], [0], [1], [0, 0, 1, 1], [], []>} : vector<8x4xf32>, vector<4x256xf32>, vector<8x256xf32> -> vector<8x256xf32>
    %67 = arith.addf %49, %66 : vector<8x256xf32>
    %c0_48 = arith.constant 0 : index
    %c0_49 = arith.constant 0 : index
    %c34 = arith.constant 34 : index
    %68 = vector.load %arg1[%c0_48, %c0_49, %c34] : memref<1x4x290xf32, #tpu.memory_space<vmem>>, vector<1x4x256xf32>
    %69 = vector.shape_cast %68 : vector<1x4x256xf32> to vector<4x256xf32>
    %c8 = arith.constant 8 : index
    %c0_50 = arith.constant 0 : index
    %c0_51 = arith.constant 0 : index
    %70 = vector.load %arg2[%c8, %c0_50, %c0_51] : memref<9x8x4xf32, #tpu.memory_space<vmem>>, vector<1x8x4xf32>
    %71 = vector.shape_cast %70 : vector<1x8x4xf32> to vector<8x4xf32>
    %cst_52 = arith.constant dense<0.000000e+00> : vector<8x256xf32>
    %72 = tpu.matmul %71, %69, %cst_52 {dimension_numbers = #tpu.dot_dimension_numbers<[1], [0], [0], [1], [0, 0, 1, 1], [], []>} : vector<8x4xf32>, vector<4x256xf32>, vector<8x256xf32> -> vector<8x256xf32>
    %73 = arith.addf %55, %72 : vector<8x256xf32>
    %c0_i32_53 = arith.constant 0 : i32
    %74 = vector.broadcast %c0_i32_53 : i32 to vector<1x256xi32>
    %75 = arith.cmpi eq, %16, %74 : vector<1x256xi32>
    %cst_54 = arith.constant 0.000000e+00 : f32
    %76 = vector.shape_cast %75 : vector<1x256xi1> to vector<1x256xi1>
    %77 = vector.broadcast %76 : vector<1x256xi1> to vector<8x256xi1>
    %78 = vector.broadcast %cst_54 : f32 to vector<8x256xf32>
    %79 = arith.select %77, %78, %61 : vector<8x256xi1>, vector<8x256xf32>
    %80 = arith.addf %67, %79 : vector<8x256xf32>
    %c15_i32 = arith.constant 15 : i32
    %81 = vector.broadcast %c15_i32 : i32 to vector<1x256xi32>
    %82 = arith.cmpi eq, %16, %81 : vector<1x256xi32>
    %cst_55 = arith.constant 0.000000e+00 : f32
    %83 = vector.shape_cast %82 : vector<1x256xi1> to vector<1x256xi1>
    %84 = vector.broadcast %83 : vector<1x256xi1> to vector<8x256xi1>
    %85 = vector.broadcast %cst_55 : f32 to vector<8x256xf32>
    %86 = arith.select %84, %85, %73 : vector<8x256xi1>, vector<8x256xf32>
    %87 = arith.addf %80, %86 : vector<8x256xf32>
    %c0_56 = arith.constant 0 : index
    %c0_57 = arith.constant 0 : index
    %88 = vector.load %arg3[%c0_56, %c0_57] : memref<8x1xf32, #tpu.memory_space<vmem>>, vector<8x1xf32>
    %89 = vector.broadcast %88 : vector<8x1xf32> to vector<8x256xf32>
    %90 = arith.addf %87, %89 : vector<8x256xf32>
    %cst_58 = arith.constant 0.000000e+00 : f32
    %91 = vector.broadcast %cst_58 : f32 to vector<8x256xf32>
    %92 = arith.maximumf %90, %91 : vector<8x256xf32>
    %c0_59 = arith.constant 0 : index
    %c0_60 = arith.constant 0 : index
    %c0_61 = arith.constant 0 : index
    %93 = vector.load %arg4[%c0_59, %c0_60, %c0_61] : memref<1x8x256xf32, #tpu.memory_space<vmem>>, vector<1x8x256xf32>
    %94 = vector.shape_cast %93 : vector<1x8x256xf32> to vector<8x256xf32>
    %95 = vector.shape_cast %92 : vector<8x256xf32> to vector<1x8x256xf32>
    tpu.vector_store %arg4[%c0_59, %c0_60, %c0_61], %95 {strides = array<i32>} : memref<1x8x256xf32, #tpu.memory_space<vmem>>, vector<1x8x256xf32>,
    return
  }
  func.func @transform_0(%arg0: i32) -> (i32, i32, i32) {
    %c0_i32 = arith.constant 0 : i32
    %c0_i32_0 = arith.constant 0 : i32
    %c0_i32_1 = arith.constant 0 : i32
    return %arg0, %c0_i32, %c0_i32_0 : i32, i32, i32
  }
  func.func @transform_1(%arg0: i32) -> (i32, i32, i32) {
    %c0_i32 = arith.constant 0 : i32
    %c0_i32_0 = arith.constant 0 : i32
    %c0_i32_1 = arith.constant 0 : i32
    %c0_i32_2 = arith.constant 0 : i32
    return %c0_i32, %c0_i32_0, %c0_i32_1 : i32, i32, i32
  }
  func.func @transform_2(%arg0: i32) -> (i32, i32) {
    %c0_i32 = arith.constant 0 : i32
    %c0_i32_0 = arith.constant 0 : i32
    %c0_i32_1 = arith.constant 0 : i32
    return %c0_i32, %c0_i32_0 : i32, i32
  }
  func.func @transform_3(%arg0: i32) -> (i32, i32, i32) {
    %c0_i32 = arith.constant 0 : i32
    %c0_i32_0 = arith.constant 0 : i32
    %c0_i32_1 = arith.constant 0 : i32
    return %arg0, %c0_i32, %c0_i32_0 : i32, i32, i32
  }
}

</mosaic_0001>

<bundles_post_ra>
// kernel: tpu_custom_call.1
= control target key start
LH: loop header
LB: loop body
LE: loop exit
PB: predicated region body
PF: predicated region fallthrough
CT: control target
= control target key end

     0   :  { %8 = vsyncpa [#allocation3], 0  ;;  %s1491_s0 = inlined_call_operand.vmem [shape: f32[2,4,290], index: 0, kind: input, shape index: {}]   ;;  %s1492_s1 = inlined_call_operand.vmem [shape: f32[9,8,4], index: 1, kind: input, shape index: {}]   ;;  %s1493_s2 = inlined_call_operand.vmem [shape: f32[8,1], index: 2, kind: input, shape index: {}]   ;;  %s1494_s3 = inlined_call_operand.hbm [shape: f32[2,8,256], index: 3, kind: output, shape index: {}]  }
   0x1   :  { %10 = vsyncpa [#allocation3 + $0x1], 0  ;;  %s1323_s12 = smov 0   ;;  %s1325_s13 = smov 0  }
   0x2   :  { %s1327_s14 = smov 0   ;;  %s1329_s15 = smov 0  }
   0x3 LB: > { %s1344_s16 = sadd.s32 4294967295, %s1290_s15   ;;  %s1131_s17 = sadd.s32 4294967294, %s1290_s15   ;;  %s1290_s15 = sphi %s1329_s15, %s1500_s15   ;;  %s1286_s14 = sphi %s1327_s14, %s1499_s14   ;;  %s1282_s13 = sphi %s1325_s13, %s1498_s13   ;;  %s1278_s12 = sphi %s1323_s12, %s1497_s12  }
   0x4   : > { %s1348_s18 = sadd.s32 1, %s1290_s15   ;;  %s91_s19 = sadd.s32 1, %s1286_s14 }
   0x5   : > { %s88_s20 = ssub.s32 %s1290_s15, %s1348_s18  ;;  %p101_p0 = scmp.ne.s32.totalorder %s1286_s14, %s1282_s13 }
   0x6   : > { %p89_p1 = scmp.eq.s32.totalorder %s88_s20, 0  ;;  %p102_p2 = scmp.eq.s32.totalorder %s1344_s16, 1 }
   0x7   : > { %p107_p3 = scmp.ne.s32.totalorder %s1282_s13, %s1278_s12  ;;  %p108_p4 = scmp.eq.s32.totalorder %s1131_s17, 1 }
   0x8   : > { %s1359_s21 = scalar_select %p89_p1, %s1286_s14, %s91_s19  }
   0x9   : > { %p1361_p5 = por %p102_p2, %p101_p0  ;;  %p1365_p6 = por %p108_p4, %p107_p3 }
   0xa   : > { %p1134_p7 = scmp.ge.s32.totalorder %s1290_s15, 1  ;;  %p140_p8 = scmp.lt.s32.totalorder %s1290_s15, 3 }
   0xc   : > { %p141_p9 = pnand %p1134_p7, %p140_p8 }
   0xd   : > { %p164_p10 = scmp.lt.s32.totalorder (!%p141_p9), %s1344_s16, 1  ;;  %s1293_s29 = smov (!%p141_p9), 112  }
   0xe   : > { %144 = sbr.rel (%p141_p9) target bundleno = 404 (0x194), region = 32  ;;  %s1294_s5 = smov (!%p141_p9), 111  }
   0xf   : > { %s1295_s6 = smov (!%p141_p9), 127   ;;  %s1296_s7 = smov (!%p141_p9), 110  }
  0x10   : > { %s1297_s8 = smov (!%p141_p9), 126   ;;  %s1298_s9 = smov (!%p141_p9), 96  }
  0x11   : > { %s1300_s10 = smov (!%p141_p9), 95   ;;  %s1301_s11 = smov (!%p141_p9), 94  }
  0x12   : > { %s161_s17 = sand.u32 (!%p141_p9), 1, %s1282_s13   ;;  %s1177_s20 = sshll.u32 (!%p141_p9), %s1344_s16, 8 }
  0x13   : > { %s165_s24 = scalar_select %p164_p10, %s1344_s16, 1  ;;  %v1292_v0 = vmov 0.0   ;;  %vm221_vm0 = vcmask 1043456   ;;  %v197_v5 = vld [vmem:[%s1492_s1] sm:$0xff]  ;;  %vm217_vm1 = vcmask 31744   ;;  %v1299_v9 = vmov 0  }
  0x14   : > { %290 = vmatprep.mubr.f32.mxu0 %v1292_v0  ;;  %368 = vmatprep.mubr.f32.mxu1 %v1292_v0  ;;  %v1045_v11 = vld [vmem:[%s1493_s2] sm:$0xff]  ;;  %vm214_vm2 = vcmask 916480   ;;  %vm388_vm3 = vcmask 908288   ;;  %v1139_v20 = vld [vmem:[%s1492_s1 + $0x18] sm:$0xff]  ;;  %vm475_vm4 = vcmask 1039360   ;;  %v1137_v29 = vld [vmem:[%s1492_s1 + $0x8] sm:$0xff] }
  0x15   : > { %s1178_s25 = smul.u32 12, %s165_s24  ;;  %1228 = vset.pattern.permute.xlu0 %v1299_v9  ;;  %v1146_v26 = vld [vmem:[%s1492_s1 + $0x20] sm:$0xff]  ;;  %vm569_vm5 = vcmask 900096   ;;  %v1153_v35 = vld [vmem:[%s1492_s1 + $0x28] sm:$0xff]  ;;  %vm656_vm6 = vcmask 1031168   ;;  %v1138_v41 = vld [vmem:[%s1492_s1 + $0x10] sm:$0xff] }
  0x16   : > { %vm750_vm7 = vcmask 785408   ;;  %v1160_v47 = vld [vmem:[%s1492_s1 + $0x30] sm:$0xff]  ;;  %vm846_vm8 = vcmask 777216   ;;  %v1164_v53 = vld [vmem:[%s1492_s1 + $0x38] sm:$0xff]  ;;  %vm942_vm9 = vcmask 769024   ;;  %v1168_v59 = vld [vmem:[%s1492_s1 + $0x40] sm:$0xff] }
  0x17   : > { %s1376_s28 = scalar_lea.vmem %s1491_s0, %s1178_s25  ;;  %s1135_s19 = sshll.u32 %s161_s17, 4 }
  0x18   : > { %v198_v1 = vld [vmem:[%s1376_s28 + $0x8] sm:$0xf]  ;;  %v196_v2 = vld [vmem:[%s1376_s28] sm:$0xff]  ;;  %s163_s24 = scalar_lea.vmem [#allocation2], %s1135_s19  ;;  %s1302_s16 = smov [#allocation2]  }
  0x19   : > { %212 = vrot.lane.b32.xlu0 %v198_v1, %s1293_s29  ;;  %208 = vrot.lane.b32.xlu1 %v196_v2, %s1293_s29  ;;  %v381_v3 = vcombine.high %v196_v2, %v196_v2  ;;  %v376_v4 = vld [vmem:[%s1376_s28 + $0x8] sm:$0xf]  ;;  %s1072_s25 = sshll.u32 %s163_s24, 4  ;;  %s1234_s4 = sshll.u32 %s1302_s16, 4  ;;  %s1073_s25 = int_to_ptr.vmem [resolvable:$true] %s1072_s25  ;;  %s1235_s4 = int_to_ptr.vmem [resolvable:$false] %s1234_s4 }
  0x1a   : > { %v557_v6 = vld [vmem:[%s1376_s28 + $0x8] sm:$0xf]  ;;  %s1230_s30 = scalar_lea.vmem %s1073_s25, 256  ;;  %p1237_p0 = scmp.lt.s32.totalorder %s1073_s25, %s1235_s4 }
  0x1b   : > { %1143 = vmatprep.subr.msk.mxu1 %vm221_vm0, %v381_v3  ;;  %v738_v7 = vld [vmem:[%s1376_s28 + $0x8] sm:$0xf]  ;;  %p1231_p11 = scmp.ne.s32.totalorder %s1073_s25, %s1230_s30 }
  0x1c   : > { %1144 = vmatpush1.msk.msra.mxu1 %vm221_vm0, %v196_v2  ;;  %v834_v8 = vld [vmem:[%s1376_s28 + $0x8] sm:$0xf] }
  0x1d   : > { %386 = vrot.lane.b32.xlu0 %v376_v4, %s1294_s5  ;;  %382 = vrot.lane.b32.xlu1 %v196_v2, %s1294_s5  ;;  %v930_v10 = vld [vmem:[%s1376_s28 + $0x8] sm:$0xf]  ;;  %s1070_s28 = scalar_lea.hbm %s1494_s3, %s1177_s20  ;;  %p1232_p12 = pnand %p1231_p11, %p1361_p5 }
  0x1e   : > { %1145 = vmatmul.mubr.msk.f32.vlgmr.msra.gmra.mxu1 %vm217_vm1, %v197_v5  ;;  %v169_v5 = vlaneseq }
  0x1f   : > { %549 = vmatprep.mubr.f32.mxu1 %v1292_v0  ;;  %p1233_p13 = pneg %p1232_p12 }
  0x21   : > { %384 = vrot.lane.b32.xlu1 %v381_v3, %s1294_s5  ;;  %210 = vrot.lane.b32.xlu0 %v381_v3, %s1293_s29  ;;  %s1058_s29 = scalar_lea.sflag [#allocation3], %s161_s17  ;;  %s1236_s5 = scalar_lea.vmem %s1235_s4, 512 }
  0x22   : > { %p1238_p1 = scmp.lt.s32.totalorder %s1236_s5, %s1230_s30 }
  0x24   : > { %p1239_p2 = por %p1238_p1, %p1237_p0 }
  0x25   : > { %473 = vrot.lane.b32.xlu1 %v198_v1, %s1295_s6  ;;  %471 = vrot.lane.b32.xlu0 %v381_v3, %s1295_s6 }
  0x26   : > { %p1240_p3 = pnand %p1239_p2, %p1233_p13 }
  0x29   : > { %565 = vrot.lane.b32.xlu1 %v381_v3, %s1296_s7  ;;  %469 = vrot.lane.b32.xlu0 %v196_v2, %s1295_s6 }
  0x2d   : > { %563 = vrot.lane.b32.xlu1 %v196_v2, %s1296_s7  ;;  %567 = vrot.lane.b32.xlu0 %v557_v6, %s1296_s7 }
  0x31   : > { %654 = vrot.lane.b32.xlu1 %v198_v1, %s1297_s8  ;;  %652 = vrot.lane.b32.xlu0 %v381_v3, %s1297_s8 }
  0x35   : > { %746 = vrot.lane.b32.xlu1 %v381_v3, %s1298_s9  ;;  %650 = vrot.lane.b32.xlu0 %v196_v2, %s1297_s8 }
  0x39   : > { %744 = vrot.lane.b32.xlu1 %v196_v2, %s1298_s9  ;;  %748 = vrot.lane.b32.xlu0 %v738_v7, %s1298_s9 }
  0x3d   : > { %844 = vrot.lane.b32.xlu1 %v834_v8, %s1300_s10  ;;  %842 = vrot.lane.b32.xlu0 %v381_v3, %s1300_s10  ;;  %v170_v8 = vand.u32 127, %v169_v5 }
  0x41   : > { %938 = vrot.lane.b32.xlu1 %v381_v3, %s1301_s11  ;;  %840 = vrot.lane.b32.xlu0 %v196_v2, %s1300_s10 }
  0x45   : > { %936 = vrot.lane.b32.xlu1 %v196_v2, %s1301_s11  ;;  %940 = vrot.lane.b32.xlu0 %v930_v10, %s1301_s11 }
  0x49   : > { %1048 = vperm.xlu0 %1228, %v1045_v11   ;;  %v171_v11 = vadd.s32 128, %v170_v8 }
  0x8b   : > { %v213_v12 = vpop.permute.xlu0 %212  ;;  %v209_v13 = vpop.permute.xlu1 %208 }
  0x8f   : > { %v387_v14 = vpop.permute.xlu0 %386  ;;  %v383_v15 = vpop.permute.xlu1 %382 }
  0x93   : > { %v385_v16 = vpop.permute.xlu1 %384  ;;  %v211_v17 = vpop.permute.xlu0 %210 }
  0x94   : > { %v216_v18 = vsel %vm214_vm2, %v211_v17, %v213_v12  ;;  %v215_v19 = vsel %vm214_vm2, %v209_v13, %v211_v17  ;;  %v390_v21 = vsel %vm388_vm3, %v385_v16, %v387_v14  ;;  %v389_v22 = vsel %vm388_vm3, %v383_v15, %v385_v16 }
  0x95   : > { %1140 = vmatprep.subr.msk.mxu0 %vm221_vm0, %v216_v18  ;;  %v176_v12 = vand.u32 15, %v170_v8  ;;  %v183_v16 = vand.u32 15, %v171_v11 }
  0x96   : > { %1141 = vmatpush1.msk.msra.mxu0 %vm221_vm0, %v215_v19 }
  0x97   : > { %v474_v23 = vpop.permute.xlu1 %473  ;;  %1147 = vmatprep.subr.msk.mxu0 %vm221_vm0, %v390_v21  ;;  %v472_v24 = vpop.permute.xlu0 %471  ;;  %1142 = vmatmul.mubr.msk.f32.vlgmr.msra.gmra.mxu0 %vm217_vm1, %v1139_v20  ;;  %vm1025_vm10 = vcmp.eq.s32.totalorder %v176_v12, 0  ;;  %vm1026_vm11 = vcmp.eq.s32.totalorder %v183_v16, 0  ;;  %vm1035_vm12 = vcmp.eq.s32.totalorder %v176_v12, 15  ;;  %vm1036_vm13 = vcmp.eq.s32.totalorder %v183_v16, 15 }
  0x98   : > { %v477_v25 = vsel %vm475_vm4, %v472_v24, %v474_v23  ;;  %1148 = vmatpush1.msk.msra.mxu0 %vm221_vm0, %v389_v22  ;;  %462 = vmatprep.mubr.f32.mxu0 %v1292_v0 }
  0x99   : > { %1150 = vmatprep.subr.msk.mxu1 %vm221_vm0, %v477_v25 }
  0x9b   : > { %v566_v27 = vpop.permute.xlu1 %565  ;;  %v470_v28 = vpop.permute.xlu0 %469  ;;  %1149 = vmatmul.mubr.msk.f32.vlgmr.msra.gmra.mxu0 %vm217_vm1, %v1146_v26 }
  0x9c   : > { %v476_v30 = vsel %vm475_vm4, %v470_v28, %v472_v24  ;;  %643 = vmatprep.mubr.f32.mxu0 %v1292_v0 }
  0x9d   : > { %1151 = vmatpush1.msk.msra.mxu1 %vm221_vm0, %v476_v30 }
  0x9e   : > { %1152 = vmatmul.mubr.msk.f32.vlgmr.msra.gmra.mxu1 %vm217_vm1, %v1137_v29 }
  0x9f   : > { %v564_v31 = vpop.permute.xlu1 %563  ;;  %v568_v32 = vpop.permute.xlu0 %567  ;;  %730 = vmatprep.mubr.f32.mxu1 %v1292_v0 }
  0xa0   : > { %v570_v33 = vsel %vm569_vm5, %v564_v31, %v566_v27  ;;  %v571_v34 = vsel %vm569_vm5, %v566_v27, %v568_v32 }
  0xa1   : > { %1154 = vmatprep.subr.msk.mxu0 %vm221_vm0, %v571_v34 }
  0xa2   : > { %1155 = vmatpush1.msk.msra.mxu0 %vm221_vm0, %v570_v33 }
  0xa3   : > { %v655_v36 = vpop.permute.xlu1 %654  ;;  %v653_v37 = vpop.permute.xlu0 %652  ;;  %1156 = vmatmul.mubr.msk.f32.vlgmr.msra.gmra.mxu0 %vm217_vm1, %v1153_v35 }
  0xa4   : > { %v658_v38 = vsel %vm656_vm6, %v653_v37, %v655_v36  ;;  %824 = vmatprep.mubr.f32.mxu0 %v1292_v0 }
  0xa5   : > { %1157 = vmatprep.subr.msk.mxu1 %vm221_vm0, %v658_v38 }
  0xa7   : > { %v747_v39 = vpop.permute.xlu1 %746  ;;  %v651_v40 = vpop.permute.xlu0 %650 }
  0xa8   : > { %v657_v42 = vsel %vm656_vm6, %v651_v40, %v653_v37 }
  0xa9   : > { %1158 = vmatpush1.msk.msra.mxu1 %vm221_vm0, %v657_v42 }
  0xaa   : > { %1159 = vmatmul.mubr.msk.f32.vlgmr.msra.gmra.mxu1 %vm217_vm1, %v1138_v41 }
  0xab   : > { %v745_v43 = vpop.permute.xlu1 %744  ;;  %v749_v44 = vpop.permute.xlu0 %748  ;;  %920 = vmatprep.mubr.f32.mxu1 %v1292_v0 }
  0xac   : > { %v751_v45 = vsel %vm750_vm7, %v745_v43, %v747_v39  ;;  %v752_v46 = vsel %vm750_vm7, %v747_v39, %v749_v44 }
  0xad   : > { %1161 = vmatprep.subr.msk.mxu0 %vm221_vm0, %v752_v46 }
  0xae   : > { %1162 = vmatpush1.msk.msra.mxu0 %vm221_vm0, %v751_v45 }
  0xaf   : > { %v845_v48 = vpop.permute.xlu1 %844  ;;  %1163 = vmatmul.mubr.msk.f32.vlgmr.msra.gmra.mxu0 %vm217_vm1, %v1160_v47  ;;  %v843_v49 = vpop.permute.xlu0 %842 }
  0xb0   : > { %v848_v50 = vsel %vm846_vm8, %v843_v49, %v845_v48  ;;  %1016 = vmatprep.mubr.f32.mxu0 %v1292_v0 }
  0xb1   : > { %1165 = vmatprep.subr.msk.mxu1 %vm221_vm0, %v848_v50 }
  0xb3   : > { %v939_v51 = vpop.permute.xlu1 %938  ;;  %v841_v52 = vpop.permute.xlu0 %840 }
  0xb4   : > { %v847_v54 = vsel %vm846_vm8, %v841_v52, %v843_v49 }
  0xb5   : > { %1166 = vmatpush1.msk.msra.mxu1 %vm221_vm0, %v847_v54 }
  0xb6   : > { %1167 = vmatmul.mubr.msk.f32.vlgmr.msra.gmra.mxu1 %vm217_vm1, %v1164_v53 }
  0xb7   : > { %v937_v55 = vpop.permute.xlu1 %936  ;;  %v941_v56 = vpop.permute.xlu0 %940 }
  0xb8   : > { %v943_v57 = vsel %vm942_vm9, %v937_v55, %v939_v51  ;;  %v944_v58 = vsel %vm942_vm9, %v939_v51, %v941_v56 }
  0xb9   : > { %1169 = vmatprep.subr.msk.mxu0 %vm221_vm0, %v944_v58 }
  0xba   : > { %1170 = vmatpush1.msk.msra.mxu0 %vm221_vm0, %v943_v57 }
  0xbb   : > { %1171 = vmatmul.mubr.msk.f32.vlgmr.msra.gmra.mxu0 %vm217_vm1, %v1168_v59 }
  0xc4   : > { %v1049_v35 = vpop.permute.xlu0 %1048 }
  0xde   : > { %v370_v61 = vpop.f32.mrf.mxu1 }
  0xe0   : > { %v372_v63 = vpop.f32.mrf.mxu1 }
 0x157   : > { %v292_v60 = vpop.f32.mrf.mxu0 }
 0x158   : > { %v371_v13 = vadd.f32 %v370_v61, %v292_v60 }
 0x159   : > { %v294_v62 = vpop.f32.mrf.mxu0 }
 0x15a   : > { %v373_v18 = vadd.f32 %v372_v63, %v294_v62 }
 0x15b   : > { %v464_v0 = vpop.f32.mrf.mxu0 }
 0x15d   : > { %v466_v2 = vpop.f32.mrf.mxu0 }
 0x15e   : > { %v551_v1 = vpop.f32.mrf.mxu1 }
 0x15f   : > { %v552_v15 = vadd.f32 %v551_v1, %v464_v0 }
 0x160   : > { %v553_v3 = vpop.f32.mrf.mxu1 }
 0x161   : > { %v554_v21 = vadd.f32 %v553_v3, %v466_v2 }
 0x163   : > { %v645_v4 = vpop.f32.mrf.mxu0 }
 0x165   : > { %v647_v7 = vpop.f32.mrf.mxu0 }
 0x16a   : > { %v732_v6 = vpop.f32.mrf.mxu1 }
 0x16b   : > { %v733_v24 = vadd.f32 %v732_v6, %v645_v4 }
 0x16c   : > { %v734_v9 = vpop.f32.mrf.mxu1 }
 0x16d   : > { %v735_v28 = vadd.f32 %v734_v9, %v647_v7 }
 0x16f   : > { %v826_v10 = vpop.f32.mrf.mxu0 }
 0x170   : > { %v831_v19 = vadd.f32 %v826_v10, %v371_v13 }
 0x171   : > { %v828_v17 = vpop.f32.mrf.mxu0 }
 0x172   : > { %v832_v23 = vadd.f32 %v828_v17, %v373_v18  ;;  %v1031_v27 = vsel %vm1025_vm10, 0.0, %v831_v19 }
 0x174   : > { %v1032_v32 = vsel %vm1026_vm11, 0.0, %v832_v23 }
 0x176   : > { %v922_v14 = vpop.f32.mrf.mxu1 }
 0x177   : > { %v927_v22 = vadd.f32 %v922_v14, %v552_v15 }
 0x178   : > { %v924_v20 = vpop.f32.mrf.mxu1 }
 0x179   : > { %v928_v25 = vadd.f32 %v924_v20, %v554_v21  ;;  %v1033_v30 = vadd.f32 %v1031_v27, %v927_v22 }
 0x17b   : > { %v1018_v26 = vpop.f32.mrf.mxu0  ;;  %v1034_v36 = vadd.f32 %v1032_v32, %v928_v25 }
 0x17c   : > { %v1023_v29 = vadd.f32 %v1018_v26, %v733_v24 }
 0x17d   : > { %v1020_v31 = vpop.f32.mrf.mxu0 }
 0x17e   : > { %v1041_v33 = vsel %vm1035_vm12, 0.0, %v1023_v29  ;;  %v1024_v34 = vadd.f32 %v1020_v31, %v735_v28 }
 0x17f   : > { %v1043_v37 = vadd.f32 %v1041_v33, %v1033_v30 }
 0x180   : > { %v1042_v38 = vsel %vm1036_vm13, 0.0, %v1024_v34 }
 0x181   : > { %v1044_v39 = vadd.f32 %v1042_v38, %v1034_v36  ;;  %v1051_v40 = vadd.f32 %v1049_v35, %v1043_v37 }
 0x183   : > { %v1052_v41 = vadd.f32 %v1049_v35, %v1044_v39  ;;  %v1053_v42 = vmax.f32 %v1051_v40, 0.0 }
 0x185   : > { %v1054_v43 = vmax.f32 %v1052_v41, 0.0  ;;  %1055 = vst [vmem:[%s163_s24] sm:$0xff] %v1053_v42 }
 0x187   : > { %1056 = vst [vmem:[%s163_s24 + $0x8] sm:$0xff] %v1054_v43 }
 0x188   : > { %1243 = shalt.err (!%p1240_p3)
}
 0x189   : > { %s1244_s6 = scalar_lea.hbm %s1070_s28, 256  ;;  %s1248_s9 = scalar_lea.hbm %s1494_s3, 512 }
 0x18a   : > { %p1245_p4 = scmp.ne.s32.totalorder %s1070_s28, %s1244_s6  ;;  %p1249_p9 = scmp.lt.s32.totalorder %s1070_s28, %s1494_s3 }
 0x18b   : > { %p1250_p10 = scmp.lt.s32.totalorder %s1248_s9, %s1244_s6 }
 0x18c   : > { %p1246_p7 = pnand %p1245_p4, %p1361_p5 }
 0x18d   : > { %p1251_p11 = por %p1250_p10, %p1249_p9 }
 0x18e   : > { %p1247_p8 = pneg %p1246_p7 }
 0x190   : > { %p1252_p12 = pnand %p1251_p11, %p1247_p8 }
 0x192   : > { %1255 = shalt.err (!%p1252_p12)
}
 0x193   : > { %1179 = dma.vmem_to_hbm [thread:$0]  (%p1361_p5), %s1073_s25, 256, %s1070_s28, %s1058_s29  }
 0x194 PF: > { %p1185_p13 = scmp.ge.s32.totalorder %s1290_s15, 2  ;;  %s1084_s17 = sand.u32 1, %s1278_s12  }
 0x195   : > { %s1085_s19 = scalar_lea.sflag [#allocation3], %s1084_s17 }
 0x196   : > { %p1182_p0 = pnand %p1185_p13, %p1365_p6 }
 0x198   : > { %p1183_p1 = pneg %p1182_p0 }
 0x19a   : > { %1273 = dma.done.wait (%p1183_p1), %s1085_s19, 256  }
 0x19b   : > { %1275 = vsyncadd (%p1183_p1), %s1085_s19, 4294967040  ;;  %p13_p2 = scmp.ge.s32.totalorder %s1348_s18, 4   ;;  %s1497_s12 = smov %s1282_s13 }
 0x19c   : > { %s1498_s13 = smov %s1286_s14  ;;  %s1499_s14 = smov %s1359_s21 }
 0x19d   : > { %s1500_s15 = smov %s1348_s18  ;;  %15 = sbr.rel (!%p13_p2) target bundleno = 3 (0x3), region = 75 }
 0x1a2   :  { %1090 = vsyncpa [#allocation3], 1 }
 0x1a3   :  { %1092 = vsyncpa [#allocation3 + $0x1], 1 }

</bundles_post_ra>
